<compile_context>
chip_gen: v5e
topology: v5e:2x2
jax: 0.10.0
libtpu: 0.0.40
codegen_flags: <defaults>
</compile_context>

<pallas_src>
import jax
import jax.numpy as jnp
from jax import lax
from jax.experimental import pallas as pl
from jax.experimental.pallas import tpu as pltpu


def _round_up(x, m):
    return (x + m - 1) // m * m


def _attr_net_kernel(lens_item_ref, lens_user_ref,
                     item_seq_ref, user_seq_ref,
                     user_emb_ref, item_emb_ref,
                     w_ref, b_ref, out_ref, concat_ref):
    """One (batch-tile, vocab-tile) grid step.

    At vocab tile j == 0 the masked-mean pooling and the 4E-wide concat are
    computed and cached in `concat_ref` (VMEM scratch, persists across grid
    steps); every vocab tile then runs one (TB,4E)x(4E,TV) MXU matmul."""

    def masked_mean(seq_ref, lens_ref):
        lens = lens_ref[...]                                          # (TB, 1) int32
        # Validity mask built directly in (TB, L, E) layout (iota along the
        # seq/sublane axis) -> no (TB, L) -> (TB, L, 1) relayout needed.
        pos = lax.broadcasted_iota(jnp.int32, seq_ref.shape, 1)        # (TB, L, E)
        mask = (pos < lens[:, :, None]).astype(jnp.float32)            # (TB, L, E)
        s = jnp.sum(seq_ref[...] * mask, axis=1)                       # (TB, E)
        # valid count == lens (lens <= L by construction); guard zero-length rows
        # (only reachable via batch padding; real rows have lens >= 1).
        cnt = jnp.maximum(lens.astype(jnp.float32), 1.0)               # (TB, 1)
        return s * pl.reciprocal(cnt)

    @pl.when(pl.program_id(1) == 0)
    def _():
        item_x = masked_mean(item_seq_ref, lens_item_ref)              # (TB, E)
        user_x = masked_mean(user_seq_ref, lens_user_ref)              # (TB, E)
        concat_ref[...] = jnp.concatenate(
            [user_emb_ref[...], user_x, item_emb_ref[...], item_x], axis=-1)

    out_ref[...] = (
        jnp.dot(concat_ref[...], w_ref[...], preferred_element_type=jnp.float32)
        + b_ref[...])                                                  # (TB, TV)


def attr_network_forward(attr_item, attr_lens_item, item_ids,
                         attr_user, attr_lens_user, user_ids, params,
                         *, block_b=128, block_v=512):
    """Equivalent of _ATTR_NETWORK.forward -> (logits, None, None)."""
    # --- XLA glue: data-dependent embedding-table gathers stay outside the kernel.
    # TODO(synk): fuse the attr_emb gathers into the kernel (scalar-prefetched index
    # arrays + VMEM-resident table) to remove the HBM round-trip of the gathered
    # sequence embeddings at large batch sizes.
    item_seq = jnp.take(params["attr_emb"], attr_item, axis=0)   # (B, L_i, E)
    user_seq = jnp.take(params["attr_emb"], attr_user, axis=0)   # (B, L_u, E)
    user_emb = jnp.take(params["user_emb"], user_ids, axis=0)    # (B, E)
    item_emb = jnp.take(params["item_emb"], item_ids, axis=0)    # (B, E)

    B = item_seq.shape[0]
    E = params["attr_emb"].shape[1]
    V = params["out_w"].shape[1]

    # Batch tile (multiple of 8 sublanes); batch padded to a tile multiple.
    TB = min(_round_up(block_b, 8), _round_up(B, 8))
    Bp = _round_up(B, TB)
    pad_b = Bp - B

    # Vocab tile (multiple of 128 lanes, lane-dense output); vocab padded likewise.
    TV = min(_round_up(block_v, 128), _round_up(V, 128))
    Vp = _round_up(V, TV)
    pad_v = Vp - V

    # Pad seq-length axis to a multiple of 8 sublanes; masked positions contribute 0.
    def pad_seq(seq):
        L = seq.shape[1]
        Lp = _round_up(L, 8)
        return jnp.pad(seq, ((0, pad_b), (0, Lp - L), (0, 0)))

    item_seq = pad_seq(item_seq)
    user_seq = pad_seq(user_seq)
    user_emb = jnp.pad(user_emb, ((0, pad_b), (0, 0)))
    item_emb = jnp.pad(item_emb, ((0, pad_b), (0, 0)))
    lens_i = jnp.pad(attr_lens_item.astype(jnp.int32), (0, pad_b)).reshape(Bp, 1)
    lens_u = jnp.pad(attr_lens_user.astype(jnp.int32), (0, pad_b)).reshape(Bp, 1)
    out_w = jnp.pad(params["out_w"].astype(jnp.float32), ((0, 0), (0, pad_v)))
    out_b = jnp.pad(params["out_b"].astype(jnp.float32), ((0, 0), (0, pad_v)))

    L_i, L_u = item_seq.shape[1], user_seq.shape[1]
    grid = (Bp // TB, Vp // TV)

    cost = pl.CostEstimate(
        flops=2 * Bp * (4 * E) * Vp,
        transcendentals=0,
        bytes_accessed=4 * (Bp * (L_i + L_u) * E + 2 * Bp * E
                            + 4 * E * Vp + Vp + Bp * Vp),
    )

    logits = pl.pallas_call(
        _attr_net_kernel,
        out_shape=jax.ShapeDtypeStruct((Bp, Vp), jnp.float32),
        grid_spec=pltpu.PrefetchScalarGridSpec(
            num_scalar_prefetch=0,
            grid=grid,
            in_specs=[
                pl.BlockSpec((TB, 1), lambda i, j: (i, 0)),          # lens_item
                pl.BlockSpec((TB, 1), lambda i, j: (i, 0)),          # lens_user
                pl.BlockSpec((TB, L_i, E), lambda i, j: (i, 0, 0)),  # item_seq
                pl.BlockSpec((TB, L_u, E), lambda i, j: (i, 0, 0)),  # user_seq
                pl.BlockSpec((TB, E), lambda i, j: (i, 0)),          # user_emb
                pl.BlockSpec((TB, E), lambda i, j: (i, 0)),          # item_emb
                pl.BlockSpec((4 * E, TV), lambda i, j: (0, j)),      # out_w tile
                pl.BlockSpec((1, TV), lambda i, j: (0, j)),          # out_b tile
            ],
            out_specs=pl.BlockSpec((TB, TV), lambda i, j: (i, j)),
            scratch_shapes=[pltpu.VMEM((TB, 4 * E), jnp.float32)],   # cached concat
        ),
        compiler_params=pltpu.CompilerParams(
            # Batch tiles are independent (megacore-shardable); the vocab axis
            # carries the concat scratch so it must stay sequential ("arbitrary").
            dimension_semantics=("parallel", "arbitrary"),
        ),
        cost_estimate=cost,
    )(lens_i, lens_u, item_seq, user_seq, user_emb, item_emb, out_w, out_b)

    return logits[:B, :V], None, None


def _reference_forward(attr_item, attr_lens_item, item_ids,
                       attr_user, attr_lens_user, user_ids, params):
    """Pure-JAX reference mirroring the PyTorch module, for a correctness check."""
    def avg(attr, lens):
        emb = jnp.take(params["attr_emb"], attr, axis=0)
        L = attr.shape[1]
        mask = jnp.arange(L)[None, :] < lens[:, None]
        s = jnp.sum(emb * mask[:, :, None], axis=1)
        return s / jnp.sum(mask, axis=1, keepdims=True)

    item_x = avg(attr_item, attr_lens_item)
    user_x = avg(attr_user, attr_lens_user)
    user_embed = jnp.take(params["user_emb"], user_ids, axis=0)
    item_embed = jnp.take(params["item_emb"], item_ids, axis=0)
    out = jnp.concatenate([user_embed, user_x, item_embed, item_x], axis=-1)
    return out @ params["out_w"] + params["out_b"][0]


if __name__ == "__main__":
    key = jax.random.PRNGKey(0)
    B = 16           # batch (2 batch-grid steps with block_b=8)
    L_item, L_user = 8, 6   # padded attribute-seq lengths (== max of lens, as in torch)
    E = 32           # attr_emb_size == user_emb_size == item_emb_size
    V = 128          # vocab_size
    U, I = 16, 16    # user_num, item_num

    ks = jax.random.split(key, 11)
    inv = 1.0 / (4.0 * E) ** 0.5
    params = {
        # nn.Embedding default init is N(0,1); the others are uniform(-0.1, 0.1)
        # per f_init_weight (output weight stored transposed as (4E, V)).
        "attr_emb": jax.random.normal(ks[0], (V, E), jnp.float32),
        "user_emb": jax.random.uniform(ks[1], (U, E), jnp.float32, -0.1, 0.1),
        "item_emb": jax.random.uniform(ks[2], (I, E), jnp.float32, -0.1, 0.1),
        "out_w":    jax.random.uniform(ks[3], (4 * E, V), jnp.float32, -0.1, 0.1),
        "out_b":    jax.random.uniform(ks[4], (1, V), jnp.float32, -inv, inv),
    }

    attr_item = jax.random.randint(ks[5], (B, L_item), 0, V)
    attr_user = jax.random.randint(ks[6], (B, L_user), 0, V)
    item_ids = jax.random.randint(ks[7], (B,), 0, I)
    user_ids = jax.random.randint(ks[8], (B,), 0, U)
    # Valid-prefix lengths; force max(len) == padded length (matches f_generate_mask).
    attr_lens_item = jax.random.randint(ks[9], (B,), 1, L_item + 1).at[0].set(L_item)
    attr_lens_user = jax.random.randint(ks[10], (B,), 1, L_user + 1).at[0].set(L_user)

    logits, _, _ = attr_network_forward(attr_item, attr_lens_item, item_ids,
                                        attr_user, attr_lens_user, user_ids, params,
                                        block_b=8, block_v=128)
    jax.block_until_ready(logits)

    ref = _reference_forward(attr_item, attr_lens_item, item_ids,
                             attr_user, attr_lens_user, user_ids, params)
    assert logits.shape == (B, V)
    assert jnp.max(jnp.abs(logits - ref)) < 1e-4

    print("KERNEL_OK")
</pallas_src>

<mosaic_0001>
module attributes {stable_mosaic.version = 11 : i64} {
  func.func @_attr_net_kernel(%arg0: i32, %arg1: i32, %arg2: memref<8x1xi32, #tpu.memory_space<vmem>>, %arg3: memref<8x1xi32, #tpu.memory_space<vmem>>, %arg4: memref<8x8x32xf32, #tpu.memory_space<vmem>>, %arg5: memref<8x8x32xf32, #tpu.memory_space<vmem>>, %arg6: memref<8x32xf32, #tpu.memory_space<vmem>>, %arg7: memref<8x32xf32, #tpu.memory_space<vmem>>, %arg8: memref<128x128xf32, #tpu.memory_space<vmem>>, %arg9: memref<1x128xf32, #tpu.memory_space<vmem>>, %arg10: memref<8x128xf32, #tpu.memory_space<vmem>>, %arg11: memref<8x128xf32, #tpu.memory_space<vmem>>) attributes {dimension_semantics = [#tpu.dimension_semantics<parallel>, #tpu.dimension_semantics<arbitrary>], iteration_bounds = array<i64: 2, 1>, scalar_prefetch = 0 : i64, scratch_operands = 1 : i64, tpu.core_type = #tpu.core_type<tc>, window_params = [{transform_indices = @transform_0, window_bounds = array<i64: 8, 1>}, {transform_indices = @transform_1, window_bounds = array<i64: 8, 1>}, {transform_indices = @transform_2, window_bounds = array<i64: 8, 8, 32>}, {transform_indices = @transform_3, window_bounds = array<i64: 8, 8, 32>}, {transform_indices = @transform_4, window_bounds = array<i64: 8, 32>}, {transform_indices = @transform_5, window_bounds = array<i64: 8, 32>}, {transform_indices = @transform_6, window_bounds = array<i64: 128, 128>}, {transform_indices = @transform_7, window_bounds = array<i64: 1, 128>}, {transform_indices = @transform_8, window_bounds = array<i64: 8, 128>}]} {
    %c0_i32 = arith.constant 0 : i32
    %0 = arith.cmpi eq, %arg1, %c0_i32 : i32
    %1 = arith.extui %0 : i1 to i32
    %c0_i32_0 = arith.constant 0 : i32
    %2 = arith.cmpi ne, %1, %c0_i32_0 : i32
    scf.if %2 {
      %c0_8 = arith.constant 0 : index
      %c0_9 = arith.constant 0 : index
      %10 = vector.load %arg2[%c0_8, %c0_9] : memref<8x1xi32, #tpu.memory_space<vmem>>, vector<8x1xi32>
      %11 = tpu.iota {dimensions = array<i32: 1>} : vector<8x8x32xi32>
      %12 = vector.shape_cast %10 : vector<8x1xi32> to vector<8x1x1xi32>
      %13 = vector.broadcast %12 : vector<8x1x1xi32> to vector<8x8x32xi32>
      %14 = arith.cmpi slt, %11, %13 : vector<8x8x32xi32>
      %15 = arith.extui %14 : vector<8x8x32xi1> to vector<8x8x32xi32>
      %16 = arith.sitofp %15 : vector<8x8x32xi32> to vector<8x8x32xf32>
      %c0_10 = arith.constant 0 : index
      %c0_11 = arith.constant 0 : index
      %c0_12 = arith.constant 0 : index
      %17 = vector.load %arg4[%c0_10, %c0_11, %c0_12] : memref<8x8x32xf32, #tpu.memory_space<vmem>>, vector<8x8x32xf32>
      %18 = arith.mulf %17, %16 : vector<8x8x32xf32>
      %cst_13 = arith.constant dense<0.000000e+00> : vector<8x32xf32>
      %19 = vector.multi_reduction <add>, %18, %cst_13 [1] : vector<8x8x32xf32> to vector<8x32xf32>
      %20 = arith.sitofp %10 : vector<8x1xi32> to vector<8x1xf32>
      %cst_14 = arith.constant 1.000000e+00 : f32
      %21 = vector.broadcast %cst_14 : f32 to vector<8x1xf32>
      %22 = arith.maximumf %20, %21 : vector<8x1xf32>
      %23 = tpu.reciprocal %22 : vector<8x1xf32> -> vector<8x1xf32>
      %24 = vector.broadcast %23 : vector<8x1xf32> to vector<8x32xf32>
      %25 = arith.mulf %19, %24 : vector<8x32xf32>
      %c0_15 = arith.constant 0 : index
      %c0_16 = arith.constant 0 : index
      %26 = vector.load %arg3[%c0_15, %c0_16] : memref<8x1xi32, #tpu.memory_space<vmem>>, vector<8x1xi32>
      %27 = tpu.iota {dimensions = array<i32: 1>} : vector<8x8x32xi32>
      %28 = vector.shape_cast %26 : vector<8x1xi32> to vector<8x1x1xi32>
      %29 = vector.broadcast %28 : vector<8x1x1xi32> to vector<8x8x32xi32>
      %30 = arith.cmpi slt, %27, %29 : vector<8x8x32xi32>
      %31 = arith.extui %30 : vector<8x8x32xi1> to vector<8x8x32xi32>
      %32 = arith.sitofp %31 : vector<8x8x32xi32> to vector<8x8x32xf32>
      %c0_17 = arith.constant 0 : index
      %c0_18 = arith.constant 0 : index
      %c0_19 = arith.constant 0 : index
      %33 = vector.load %arg5[%c0_17, %c0_18, %c0_19] : memref<8x8x32xf32, #tpu.memory_space<vmem>>, vector<8x8x32xf32>
      %34 = arith.mulf %33, %32 : vector<8x8x32xf32>
      %cst_20 = arith.constant dense<0.000000e+00> : vector<8x32xf32>
      %35 = vector.multi_reduction <add>, %34, %cst_20 [1] : vector<8x8x32xf32> to vector<8x32xf32>
      %36 = arith.sitofp %26 : vector<8x1xi32> to vector<8x1xf32>
      %cst_21 = arith.constant 1.000000e+00 : f32
      %37 = vector.broadcast %cst_21 : f32 to vector<8x1xf32>
      %38 = arith.maximumf %36, %37 : vector<8x1xf32>
      %39 = tpu.reciprocal %38 : vector<8x1xf32> -> vector<8x1xf32>
      %40 = vector.broadcast %39 : vector<8x1xf32> to vector<8x32xf32>
      %41 = arith.mulf %35, %40 : vector<8x32xf32>
      %c0_22 = arith.constant 0 : index
      %c0_23 = arith.constant 0 : index
      %42 = vector.load %arg6[%c0_22, %c0_23] : memref<8x32xf32, #tpu.memory_space<vmem>>, vector<8x32xf32>
      %c0_24 = arith.constant 0 : index
      %c0_25 = arith.constant 0 : index
      %43 = vector.load %arg7[%c0_24, %c0_25] : memref<8x32xf32, #tpu.memory_space<vmem>>, vector<8x32xf32>
      %44 = tpu.concatenate %42, %41, %43, %25 in 1 : vector<8x32xf32>, vector<8x32xf32>, vector<8x32xf32>, vector<8x32xf32> -> vector<8x128xf32>
      %c0_26 = arith.constant 0 : index
      %c0_27 = arith.constant 0 : index
      %45 = vector.load %arg11[%c0_26, %c0_27] : memref<8x128xf32, #tpu.memory_space<vmem>>, vector<8x128xf32>
      tpu.vector_store %arg11[%c0_26, %c0_27], %44 {strides = array<i32>} : memref<8x128xf32, #tpu.memory_space<vmem>>, vector<8x128xf32>,
    } else {
    }
    %c0 = arith.constant 0 : index
    %c0_1 = arith.constant 0 : index
    %3 = vector.load %arg11[%c0, %c0_1] : memref<8x128xf32, #tpu.memory_space<vmem>>, vector<8x128xf32>
    %c0_2 = arith.constant 0 : index
    %c0_3 = arith.constant 0 : index
    %4 = vector.load %arg8[%c0_2, %c0_3] : memref<128x128xf32, #tpu.memory_space<vmem>>, vector<128x128xf32>
    %cst = arith.constant dense<0.000000e+00> : vector<8x128xf32>
    %5 = tpu.matmul %3, %4, %cst {dimension_numbers = #tpu.dot_dimension_numbers<[1], [0], [0], [1], [0, 0, 1, 1], [], []>} : vector<8x128xf32>, vector<128x128xf32>, vector<8x128xf32> -> vector<8x128xf32>
    %c0_4 = arith.constant 0 : index
    %c0_5 = arith.constant 0 : index
    %6 = vector.load %arg9[%c0_4, %c0_5] : memref<1x128xf32, #tpu.memory_space<vmem>>, vector<1x128xf32>
    %7 = vector.broadcast %6 : vector<1x128xf32> to vector<8x128xf32>
    %8 = arith.addf %5, %7 : vector<8x128xf32>
    %c0_6 = arith.constant 0 : index
    %c0_7 = arith.constant 0 : index
    %9 = vector.load %arg10[%c0_6, %c0_7] : memref<8x128xf32, #tpu.memory_space<vmem>>, vector<8x128xf32>
    tpu.vector_store %arg10[%c0_6, %c0_7], %8 {strides = array<i32>} : memref<8x128xf32, #tpu.memory_space<vmem>>, vector<8x128xf32>,
    return
  }
  func.func @transform_0(%arg0: i32, %arg1: i32) -> (i32, i32) {
    %c0_i32 = arith.constant 0 : i32
    %c0_i32_0 = arith.constant 0 : i32
    return %arg0, %c0_i32 : i32, i32
  }
  func.func @transform_1(%arg0: i32, %arg1: i32) -> (i32, i32) {
    %c0_i32 = arith.constant 0 : i32
    %c0_i32_0 = arith.constant 0 : i32
    return %arg0, %c0_i32 : i32, i32
  }
  func.func @transform_2(%arg0: i32, %arg1: i32) -> (i32, i32, i32) {
    %c0_i32 = arith.constant 0 : i32
    %c0_i32_0 = arith.constant 0 : i32
    %c0_i32_1 = arith.constant 0 : i32
    return %arg0, %c0_i32, %c0_i32_0 : i32, i32, i32
  }
  func.func @transform_3(%arg0: i32, %arg1: i32) -> (i32, i32, i32) {
    %c0_i32 = arith.constant 0 : i32
    %c0_i32_0 = arith.constant 0 : i32
    %c0_i32_1 = arith.constant 0 : i32
    return %arg0, %c0_i32, %c0_i32_0 : i32, i32, i32
  }
  func.func @transform_4(%arg0: i32, %arg1: i32) -> (i32, i32) {
    %c0_i32 = arith.constant 0 : i32
    %c0_i32_0 = arith.constant 0 : i32
    return %arg0, %c0_i32 : i32, i32
  }
  func.func @transform_5(%arg0: i32, %arg1: i32) -> (i32, i32) {
    %c0_i32 = arith.constant 0 : i32
    %c0_i32_0 = arith.constant 0 : i32
    return %arg0, %c0_i32 : i32, i32
  }
  func.func @transform_6(%arg0: i32, %arg1: i32) -> (i32, i32) {
    %c0_i32 = arith.constant 0 : i32
    %c0_i32_0 = arith.constant 0 : i32
    return %c0_i32, %arg1 : i32, i32
  }
  func.func @transform_7(%arg0: i32, %arg1: i32) -> (i32, i32) {
    %c0_i32 = arith.constant 0 : i32
    %c0_i32_0 = arith.constant 0 : i32
    return %c0_i32, %arg1 : i32, i32
  }
  func.func @transform_8(%arg0: i32, %arg1: i32) -> (i32, i32) {
    %c0_i32 = arith.constant 0 : i32
    return %arg0, %arg1 : i32, i32
  }
}

</mosaic_0001>

<bundles_post_ra>
// kernel: tpu_custom_call.1
= control target key start
LH: loop header
LB: loop body
LE: loop exit
PB: predicated region body
PF: predicated region fallthrough
CT: control target
= control target key end

     0   :  { %s1856_s0 = inlined_call_operand.vmem [shape: s32[16,1], index: 0, kind: input, shape index: {}]   ;;  %s1857_s1 = inlined_call_operand.vmem [shape: s32[16,1], index: 1, kind: input, shape index: {}]   ;;  %s1858_s2 = inlined_call_operand.hbm [shape: f32[16,8,32], index: 2, kind: input, shape index: {}]   ;;  %s1859_s3 = inlined_call_operand.hbm [shape: f32[16,8,32], index: 3, kind: input, shape index: {}]   ;;  %s1860_s4 = inlined_call_operand.vmem [shape: f32[16,32], index: 4, kind: input, shape index: {}]   ;;  %s1861_s5 = inlined_call_operand.vmem [shape: f32[16,32], index: 5, kind: input, shape index: {}]   ;;  %s1862_s6 = inlined_call_operand.hbm [shape: f32[128,128], index: 6, kind: input, shape index: {}]   ;;  %s1863_s7 = inlined_call_operand.vmem [shape: f32[1,128], index: 7, kind: input, shape index: {}]   ;;  %s1864_s8 = inlined_call_operand.hbm [shape: f32[16,128], index: 8, kind: output, shape index: {}]  }
   0x1   :  { %1875 = sst [smem:[#allocation20_spill]] %s1862_s6 }
   0x2   :  { %1876 = sst [smem:[#allocation21_spill]] %s1863_s7 }
   0x3   :  { %13 = vsyncpa [#allocation4], 0 }
   0x4   :  { %15 = vsyncpa [#allocation4 + $0x1], 0 }
   0x5   :  { %16 = vsyncpa [#allocation7], 0 }
   0x6   :  { %18 = vsyncpa [#allocation7 + $0x1], 0 }
   0x7   :  { %19 = vsyncpa [#allocation5], 0 }
   0x8   :  { %21 = vsyncpa [#allocation5 + $0x1], 0  ;;  %s1526_s27 = smov 0   ;;  %s1528_s28 = smov 0  }
   0x9   :  { %s1530_s29 = smov 0   ;;  %s1532_s30 = smov 0  }
   0xa   :  { %s1534_s9 = smov 0   ;;  %s1536_s10 = smov 0  }
   0xb LB: > { %1877 = sst [smem:[#allocation14_spill]] %s1451_s27  ;;  %s1557_s11 = sadd.s32 4294967295, %s1471_s10   ;;  %s1471_s10 = sphi %s1536_s10, %s27_s10   ;;  %s1467_s9 = sphi %s1534_s9, %s1899_s9   ;;  %s1463_s30 = sphi %s1532_s30, %s1898_s30   ;;  %s1459_s29 = sphi %s1530_s29, %s1902_s29   ;;  %s1455_s28 = sphi %s1528_s28, %s1901_s28   ;;  %s1451_s27 = sphi %s1526_s27, %s1900_s27  }
   0xc   : > { %1878 = sst [smem:[#allocation15_spill]] %s1467_s9  ;;  %s1156_s12 = sadd.s32 4294967294, %s1471_s10  }
   0xd   : > { %p111_p0 = scmp.ne.s32.totalorder %s1455_s28, %s1451_s27  ;;  %p112_p1 = scmp.eq.s32.totalorder %s1557_s11, 0 }
   0xe   : > { %p267_p2 = scmp.eq.s32.totalorder %s1557_s11, 1  ;;  %p273_p3 = scmp.eq.s32.totalorder %s1156_s12, 1 }
   0xf   : > { %p1566_p4 = por %p112_p1, %p111_p0  ;;  %p1157_p5 = scmp.ge.s32.totalorder %s1471_s10, 1 }
  0x10   : > { %p1571_p6 = por %p273_p3, %p111_p0  ;;  %p280_p7 = scmp.lt.s32.totalorder %s1471_s10, 3 }
  0x11   : > { %s1882_s6 = sld [smem:[#allocation20_spill]]  ;;  %s1473_s19 = smov [#allocation8]  }
  0x12   : > { %s1880_s14 = scalar_select %p1571_p6, 1, 0 }
  0x13   : > { %p1579_p8 = pnand %p1157_p5, %p280_p7  ;;  %s295_s20 = sshll.u32 %s1473_s19, 4  ;;  %s296_s20 = int_to_ptr.vmem [resolvable:$true] %s295_s20 }
  0x14   : > { %1881 = sst [smem:[#allocation16_spill]] %s1880_s14  ;;  %p1160_p11 = scmp.ge.s32.totalorder %s1471_s10, 2 }
  0x15   : > { %p1208_p9 = pneg %p1579_p8  ;;  %s1865_s21 = smov 128  }
  0x16   : > { %s1867_s22 = smov 8   ;;  %s39_s23 = sadd.s32 1, %s1467_s9 }
  0x17   : > { %s293_s17 = sshll.u32 %s1882_s6, 4  ;;  %p1209_p10 = pnand %p1208_p9, %p112_p1  ;;  %s294_s17 = int_to_ptr.hbm [resolvable:$true] %s293_s17 }
  0x18   : > { %p41_p12 = scmp.ge.s32.totalorder %s39_s23, 2  ;;  %s98_s24 = sadd.s32 1, %s1459_s29 }
  0x19   : > { %1211 = dma.hbm_to_vmem [thread:$0]  (!%p1209_p10), %s294_s17, 2048, %s296_s20, [#allocation7], %s1865_s21, %s1865_s21, %s1867_s22  }
  0x1a   : > { %p105_p13 = scmp.ne.s32.totalorder %s1459_s29, %s1455_s28  ;;  %p106_p0 = scmp.eq.s32.totalorder %s1471_s10, 0 }
  0x1b   : > { %s1904_s23 = smov (%p41_p12, %s39_s23), 0  ;;  %p1224_p7 = scmp.lt.s32.totalorder %s1471_s10, 2 }
  0x1c   : > { %1884 = sst [smem:[#allocation17_spill]] %s1904_s23  ;;  %p1598_p3 = por %p106_p0, %p105_p13 }
  0x1d   : > { %p1604_p5 = por %p267_p2, %p105_p13  ;;  %s95_s12 = ssub.s32 %s1467_s9, %s1904_s23 }
  0x1e   : > { %p96_p9 = scmp.eq.s32.totalorder %s95_s12, 0  ;;  %s329_s15 = sand.u32 1, %s1459_s29  }
  0x1f   : > { %s1886_s26 = scalar_select %p1604_p5, 1, 0 }
  0x20   : > { %s1161_s16 = sshll.u32 %s329_s15, 6  ;;  %s1196_s19 = sshll.u32 %s1467_s9, 6 }
  0x21   : > { %1887 = sst [smem:[#allocation18_spill]] %s1886_s26  ;;  %s338_s22 = scalar_lea.hbm %s1858_s2, %s1196_s19 }
  0x22   : > { %s1613_s17 = scalar_select %p96_p9, %s1459_s29, %s98_s24  }
  0x23   : > { %s333_s6 = scalar_lea.vmem [#allocation3], %s1161_s16  ;;  %s339_s27 = sshll.u32 %s338_s22, 4  ;;  %s340_s27 = int_to_ptr.hbm [resolvable:$true] %s339_s27 }
  0x24   : > { %1888 = sst [smem:[#allocation19_spill]] %s1613_s17  ;;  %s341_s14 = sshll.u32 %s333_s6, 4  ;;  %s342_s14 = int_to_ptr.vmem [resolvable:$true] %s341_s14 }
  0x25   : > { %p1213_p2 = pnand %p1224_p7, %p1598_p3  ;;  %s360_s12 = scalar_lea.hbm %s1859_s3, %s1196_s19 }
  0x26   : > { %s361_s26 = sshll.u32 %s360_s12, 4  ;;  %s330_s24 = scalar_lea.sflag [#allocation4], %s329_s15  ;;  %s362_s26 = int_to_ptr.hbm [resolvable:$true] %s361_s26 }
  0x27   : > { %s1889_s17 = smov 8   ;;  %s1890_s9 = smov 128  }
  0x28   : > { %1215 = dma.hbm_to_vmem [thread:$0]  (!%p1213_p2), %s340_s27, 1024, %s342_s14, %s330_s24, %s1890_s9, %s1890_s9, %s1889_s17  }
  0x29   : > { %s355_s21 = scalar_lea.vmem [#allocation6], %s1161_s16  ;;  %s351_s6 = sand.u32 1, %s1471_s10  }
  0x2a   : > { %s363_s20 = sshll.u32 %s355_s21, 4  ;;  %s352_s22 = scalar_lea.sflag [#allocation7], %s351_s6  ;;  %s364_s20 = int_to_ptr.vmem [resolvable:$true] %s363_s20 }
  0x2b   : > { %1218 = dma.hbm_to_vmem [thread:$0]  (!%p1213_p2), %s362_s26, 1024, %s364_s20, %s352_s22, %s1890_s9, %s1890_s9, %s1889_s17  }
  0x2c   : > { %389 = sbr.rel (%p1579_p8) target bundleno = 483 (0x1e3), region = 52  ;;  %s1634_s7 = sand.u32 (!%p1579_p8), 1, %s1455_s28  }
  0x2d   : > { %s1168_s27 = sshll.u32 (!%p1579_p8), %s1634_s7, 6  ;;  %s392_s14 = scalar_lea.sflag (!%p1579_p8), [#allocation4], %s1634_s7 }
  0x2e   : > { %s1638_s23 = scalar_lea.vmem (!%p1579_p8), [#allocation3], %s1168_s27 }
  0x31   : > { %1434 = dma.done.wait (%p1566_p4), %s392_s14, 1024  }
  0x32   : > { %1436 = vsyncadd (%p1566_p4), %s392_s14, 4294966272  ;;  %s401_s9 = sand.u32 1, %s1557_s11   ;;  %s1645_s25 = scalar_lea.vmem [#allocation6], %s1168_s27 }
  0x33   : > { %s402_s18 = scalar_lea.sflag [#allocation7], %s401_s9 }
  0x34   : > { %1438 = dma.done.wait (%p1566_p4), %s402_s18, 1024  }
  0x35   : > { %1440 = vsyncadd (%p1566_p4), %s402_s18, 4294966272 }
  0x36   : > { %1442 = dma.done.wait (%p112_p1), [#allocation7], 2048  }
  0x37   : > { %1444 = vsyncadd (%p112_p1), [#allocation7], 4294965248  ;;  %p468_p8 = scmp.lt.s32.totalorder %s1463_s30, 1  ;;  %v1476_v0 = vmov 0   ;;  %v494_v59 = vlaneseq  ;;  %v742_v62 = vld [vmem:[%s1645_s25 + $0x18] sm:$0xff]  ;;  %v1477_v63 = vmov 0.0  }
  0x38   : > { %1283 = vset.pattern.permute.xlu1 %v1476_v0  ;;  %1285 = vset.pattern.permute.xlu2 %v1476_v0  ;;  %vm575_vm11 = vcmask 261120   ;;  %v565_v46 = vld [vmem:[%s1638_s23 + $0x30] sm:$0xff]  ;;  %s1478_s6 = smov 64   ;;  %s1479_s22 = smov 32  }
  0x39   : > { %s469_s26 = scalar_select %p468_p8, %s1463_s30, 1  ;;  %1284 = vset.pattern.permute.xlu0 %v1476_v0  ;;  %v1684_v60 = vshrl.u32 %v494_v59, 7 }
  0x3a   : > { %s1480_s27 = smov 96   ;;  %s1171_s18 = sshll.u32 %s1634_s7, 3 }
  0x3b   : > { %s1657_s15 = sshll.u32 %s469_s26, 3  ;;  %s1894_s12 = sld [smem:[#allocation21_spill]] }
  0x3c   : > { %s475_s17 = scalar_lea.vmem %s1857_s1, %s1657_s15  ;;  %s471_s11 = scalar_lea.vmem %s1856_s0, %s1657_s15 }
  0x3d   : > { %v675_v1 = vld [vmem:[%s475_s17] sm:$0xff]  ;;  %s485_s20 = scalar_lea.vmem %s1861_s5, %s1657_s15  ;;  %s481_s9 = scalar_lea.vmem %s1860_s4, %s1657_s15 }
  0x3e   : > { %v1667_v2 = vld [vmem:[%s471_s11] sm:$0xff]  ;;  %v683_v3 = vperm.slane %v675_v1, 0  ;;  %v678_v4 = vrot.slane %v675_v1, 3  ;;  %v676_v5 = vrot.slane %v675_v1, 1  ;;  %v677_v9 = vrot.slane %v675_v1, 2  ;;  %s467_s11 = scalar_lea.vmem [#allocation9], %s1171_s18 }
  0x3f   : > { %v496_v8 = vrot.slane %v1667_v2, 1  ;;  %v497_v10 = vrot.slane %v1667_v2, 2  ;;  %v811_v11 = vcvt.s32.f32 %v675_v1  ;;  %v632_v13 = vcvt.s32.f32 %v1667_v2  ;;  %s979_s24 = sshll.u32 %s467_s11, 4  ;;  %s1401_s14 = scalar_lea.hbm %s1864_s8, 16  ;;  %s980_s24 = int_to_ptr.vmem [resolvable:$true] %s979_s24 }
  0x40   : > { %692 = vperm.xlu1 %1283, %v683_v3   ;;  %v686_v6 = vperm.slane %v678_v4, 0  ;;  %v684_v7 = vperm.slane %v676_v5, 0  ;;  %v685_v15 = vperm.slane %v677_v9, 0  ;;  %v679_v18 = vrot.slane %v675_v1, 4  ;;  %v561_v3 = vld [vmem:[%s1638_s23 + $0x10] sm:$0xff]  ;;  %v562_v5 = vld [vmem:[%s1638_s23 + $0x18] sm:$0xff] }
  0x41   : > { %v504_v12 = vperm.slane %v496_v8, 0  ;;  %v812_v14 = vmax.f32 %v811_v11, 1.0  ;;  %v505_v16 = vperm.slane %v497_v10, 0  ;;  %v633_v17 = vmax.f32 %v632_v13, 1.0  ;;  %v739_v9 = vld [vmem:[%s1645_s25] sm:$0xff] }
  0x42   : > { %701 = vperm.xlu2 %1285, %v686_v6   ;;  %695 = vperm.xlu0 %1284, %v684_v7   ;;  %v498_v19 = vrot.slane %v1667_v2, 3  ;;  %v503_v20 = vperm.slane %v1667_v2, 0  ;;  %v687_v21 = vperm.slane %v679_v18, 0  ;;  %v499_v24 = vrot.slane %v1667_v2, 4 }
  0x43   : > { %1287 = vrcp.f32 %v812_v14  ;;  %v680_v26 = vrot.slane %v675_v1, 5  ;;  %v681_v27 = vrot.slane %v675_v1, 6  ;;  %v682_v34 = vrot.slane %v675_v1, 7 }
  0x44   : > { %1289 = vrcp.f32 %v633_v17  ;;  %v506_v22 = vperm.slane %v498_v19, 0  ;;  %v507_v29 = vperm.slane %v499_v24, 0  ;;  %v500_v36 = vrot.slane %v1667_v2, 5 }
  0x45   : > { %v688_v31 = vperm.slane %v680_v26, 0  ;;  %v689_v32 = vperm.slane %v681_v27, 0  ;;  %v501_v37 = vrot.slane %v1667_v2, 6  ;;  %v690_v39 = vperm.slane %v682_v34, 0  ;;  %v560_v34 = vld [vmem:[%s1638_s23 + $0x8] sm:$0xff] }
  0x46   : > { %vm818_vm0 = vweird.f32 %v812_v14  ;;  %v508_v41 = vperm.slane %v500_v36, 0  ;;  %v824_v43 = vand.u32 2147483648, %v812_v14  ;;  %v822_v45 = vand.u32 2147483647, %v812_v14 }
  0x47   : > { %v509_v42 = vperm.slane %v501_v37, 0  ;;  %vm639_vm2 = vweird.f32 %v633_v17  ;;  %v645_v47 = vand.u32 2147483648, %v633_v17  ;;  %v643_v49 = vand.u32 2147483647, %v633_v17 }
  0x48   : > { %515 = vperm.xlu1 %1283, %v504_v12   ;;  %v825_v50 = vor.u32 1.1754944e-38, %v824_v43  ;;  %vm823_vm6 = vcmp.eq.f32.partialorder %v822_v45, 8.507059e+37  ;;  %v502_v52 = vrot.slane %v1667_v2, 7  ;;  %v741_v45 = vld [vmem:[%s1645_s25 + $0x10] sm:$0xff] }
  0x49   : > { %v1288_v23 = vpop.eup %1287  ;;  %v646_v53 = vor.u32 1.1754944e-38, %v645_v47  ;;  %vm644_vm7 = vcmp.eq.f32.partialorder %v643_v49, 8.507059e+37 }
  0x4a   : > { %698 = vperm.xlu0 %1284, %v685_v15   ;;  %518 = vperm.xlu2 %1285, %v505_v16   ;;  %v1290_v25 = vpop.eup %1289  ;;  %v814_v28 = vmul.f32 %v1288_v23, %v812_v14  ;;  %vm819_vm1 = vweird.f32 %v1288_v23  ;;  %v510_v56 = vperm.slane %v502_v52, 0  ;;  %v740_v14 = vld [vmem:[%s1645_s25 + $0x8] sm:$0xff]  ;;  %v745_v16 = vld [vmem:[%s1645_s25 + $0x30] sm:$0xff] }
  0x4b   : > { %v635_v30 = vmul.f32 %v1290_v25, %v633_v17  ;;  %vm640_vm3 = vweird.f32 %v1290_v25  ;;  %vm1677_vm4 = vmor %vm818_vm0, %vm819_vm1 }
  0x4c   : > { %v815_v33 = vsub.f32 1.0, %v814_v28  ;;  %vm641_vm5 = vmor %vm639_vm2, %vm640_vm3 }
  0x4d   : > { %v636_v35 = vsub.f32 1.0, %v635_v30 }
  0x4e   : > { %v816_v38 = vmul.f32 %v1288_v23, %v815_v33 }
  0x4f   : > { %v637_v40 = vmul.f32 %v1290_v25, %v636_v35 }
  0x50   : > { %512 = vperm.xlu1 %1283, %v503_v20   ;;  %v817_v44 = vadd.f32 %v1288_v23, %v816_v38 }
  0x51   : > { %v638_v48 = vadd.f32 %v1290_v25, %v637_v40 }
  0x52   : > { %704 = vperm.xlu0 %1284, %v687_v21   ;;  %521 = vperm.xlu2 %1285, %v506_v22   ;;  %v821_v51 = vsel %vm1677_vm4, %v1288_v23, %v817_v44 }
  0x53   : > { %v642_v54 = vsel %vm641_vm5, %v1290_v25, %v638_v48  ;;  %v826_v55 = vsel %vm823_vm6, %v825_v50, %v821_v51 }
  0x54   : > { %v647_v57 = vsel %vm644_vm7, %v646_v53, %v642_v54 }
  0x58   : > { %524 = vperm.xlu1 %1283, %v507_v29  }
  0x5a   : > { %707 = vperm.xlu0 %1284, %v688_v31   ;;  %710 = vperm.xlu2 %1285, %v689_v32  }
  0x60   : > { %713 = vperm.xlu1 %1283, %v690_v39  }
  0x62   : > { %527 = vperm.xlu0 %1284, %v508_v41   ;;  %530 = vperm.xlu2 %1285, %v509_v42  }
  0x68   : > { %829 = vperm.xlu1 %1283, %v826_v55  }
  0x6a   : > { %533 = vperm.xlu0 %1284, %v510_v56   ;;  %650 = vperm.xlu2 %1285, %v647_v57  }
  0x9c   : > { %v702_v58 = vpop.permute.xlu2 %701 }
  0x9d   : > { %vm718_vm8 = vcmp.lt.s32.totalorder %v1684_v60, %v702_v58 }
  0x9e   : > { %v1187_v0 = vsel %vm718_vm8, 1.0, %v1477_v63  ;;  %vm865_vm8 = vcmask 1041409  }
  0x9f   : > { %v750_v2 = vmul.f32 %v1187_v0, %v742_v62 }
  0xa1   : > { %v776_v7 = vsel %vm575_vm11, %v750_v2, 0.0 }
  0xa2   : > { %v777_v12 = vrot.slane %v776_v7, 4 }
  0xa4   : > { %v519_v61 = vpop.permute.xlu2 %518  ;;  %v778_v26 = vadd.f32 %v777_v12, %v776_v7 }
  0xa5   : > { %vm537_vm9 = vcmp.lt.s32.totalorder %v1684_v60, %v519_v61 }
  0xa6   : > { %v1178_v4 = vsel %vm537_vm9, 1.0, %v1477_v63  ;;  %v779_v35 = vrot.slane %v778_v26, 2  ;;  %vm868_vm9 = vcmask 1042434  }
  0xa7   : > { %v569_v8 = vmul.f32 %v1178_v4, %v561_v3 }
  0xa8   : > { %v780_v49 = vadd.f32 %v779_v35, %v778_v26 }
  0xa9   : > { %v590_v19 = vsel %vm575_vm11, %v569_v8, 0.0 }
  0xaa   : > { %v591_v27 = vrot.slane %v590_v19, 4  ;;  %v781_v2 = vrot.slane %v780_v49, 1 }
  0xac   : > { %v522_v1 = vpop.permute.xlu2 %521  ;;  %v592_v39 = vadd.f32 %v591_v27, %v590_v19 }
  0xad   : > { %vm538_vm10 = vcmp.lt.s32.totalorder %v1684_v60, %v522_v1  ;;  %v559_v1 = vld [vmem:[%s1638_s23] sm:$0xff] }
  0xae   : > { %v1179_v6 = vsel %vm538_vm10, 1.0, %v1477_v63  ;;  %v593_v52 = vrot.slane %v592_v39, 2  ;;  %vm871_vm10 = vcmask 1043459  }
  0xaf   : > { %v570_v11 = vmul.f32 %v1179_v6, %v562_v5  ;;  %v743_v6 = vld [vmem:[%s1645_s25 + $0x20] sm:$0xff] }
  0xb0   : > { %v594_v8 = vadd.f32 %v593_v52, %v592_v39  ;;  %v744_v39 = vld [vmem:[%s1645_s25 + $0x28] sm:$0xff] }
  0xb1   : > { %v597_v22 = vsel %vm575_vm11, %v570_v11, 0.0 }
  0xb2   : > { %v693_v10 = vpop.permute.xlu1 %692  ;;  %v598_v30 = vrot.slane %v597_v22, 4 }
  0xb3   : > { %vm715_vm12 = vcmp.lt.s32.totalorder %v1684_v60, %v693_v10 }
  0xb4   : > { %v1184_v13 = vsel %vm715_vm12, 1.0, %v1477_v63  ;;  %v696_v15 = vpop.permute.xlu0 %695  ;;  %v711_v17 = vpop.permute.xlu2 %710  ;;  %v599_v41 = vadd.f32 %v598_v30, %v597_v22  ;;  %vm877_vm12 = vcmask 1045509  }
  0xb5   : > { %v747_v18 = vmul.f32 %v1184_v13, %v739_v9  ;;  %vm716_vm13 = vcmp.lt.s32.totalorder %v1684_v60, %v696_v15  ;;  %vm721_vm14 = vcmp.lt.s32.totalorder %v1684_v60, %v711_v17 }
  0xb6   : > { %v1185_v20 = vsel %vm716_vm13, 1.0, %v1477_v63  ;;  %v1190_v21 = vsel %vm721_vm14, 1.0, %v1477_v63  ;;  %v600_v56 = vrot.slane %v599_v41, 2  ;;  %vm874_vm14 = vcmask 1044484  }
  0xb7   : > { %v755_v23 = vsel %vm575_vm11, %v747_v18, 0.0  ;;  %v748_v24 = vmul.f32 %v1185_v20, %v740_v14  ;;  %v753_v25 = vmul.f32 %v1190_v21, %v745_v16  ;;  %v1733_v21 = vadd.f32 %v781_v2, %v780_v49 }
  0xb8   : > { %v756_v31 = vrot.slane %v755_v23, 4  ;;  %v601_v11 = vadd.f32 %v600_v56, %v599_v41 }
  0xb9   : > { %v762_v28 = vsel %vm575_vm11, %v748_v24, 0.0  ;;  %v797_v29 = vsel %vm575_vm11, %v753_v25, 0.0  ;;  %v595_v25 = vrot.slane %v594_v8, 1 }
  0xba   : > { %v763_v32 = vrot.slane %v762_v28, 4  ;;  %v516_v33 = vpop.permute.xlu1 %515  ;;  %v798_v36 = vrot.slane %v797_v29, 4  ;;  %v757_v42 = vadd.f32 %v756_v31, %v755_v23  ;;  %v602_v26 = vrot.slane %v601_v11, 1  ;;  %v855_v31 = vld [vmem:[%s485_s20] sm:$0xff]  ;;  %s966_s20 = scalar_lea.sflag [#allocation5], %s1634_s7 }
  0xbb   : > { %vm536_vm15 = vcmp.lt.s32.totalorder %v1684_v60, %v516_v33  ;;  %889 = vrot.lane.b32.xlu1 %v855_v31, %s1478_s6 }
  0xbc   : > { %v699_v37 = vpop.permute.xlu0 %698  ;;  %v531_v38 = vpop.permute.xlu2 %530  ;;  %v1177_v40 = vsel %vm536_vm15, 1.0, %v1477_v63  ;;  %v764_v43 = vadd.f32 %v763_v32, %v762_v28  ;;  %v799_v50 = vadd.f32 %v798_v36, %v797_v29  ;;  %v758_v57 = vrot.slane %v757_v42, 2  ;;  %v563_v29 = vld [vmem:[%s1638_s23 + $0x20] sm:$0xff] }
  0xbd   : > { %vm717_vm0 = vcmp.lt.s32.totalorder %v1684_v60, %v699_v37  ;;  %vm541_vm1 = vcmp.lt.s32.totalorder %v1684_v60, %v531_v38  ;;  %v568_v44 = vmul.f32 %v1177_v40, %v560_v34  ;;  %vm880_vm15 = vcmask 1046534  }
  0xbe   : > { %v1186_v47 = vsel %vm717_vm0, 1.0, %v1477_v63  ;;  %v1182_v48 = vsel %vm541_vm1, 1.0, %v1477_v63  ;;  %v765_v58 = vrot.slane %v764_v43, 2  ;;  %v800_v3 = vrot.slane %v799_v50, 2 }
  0xbf   : > { %v583_v51 = vsel %vm575_vm11, %v568_v44, 0.0  ;;  %v749_v54 = vmul.f32 %v1186_v47, %v741_v45  ;;  %v573_v55 = vmul.f32 %v1182_v48, %v565_v46  ;;  %v759_v12 = vadd.f32 %v758_v57, %v757_v42 }
  0xc0   : > { %v584_v53 = vrot.slane %v583_v51, 4  ;;  %v766_v15 = vadd.f32 %v765_v58, %v764_v43  ;;  %v801_v18 = vadd.f32 %v800_v3, %v799_v50  ;;  %v596_v44 = vadd.f32 %v595_v25, %v594_v8  ;;  %v746_v3 = vld [vmem:[%s1645_s25 + $0x38] sm:$0xff]  ;;  %s1193_s25 = sshll.u32 %s1463_s30, 3 }
  0xc1   : > { %v769_v62 = vsel %vm575_vm11, %v749_v54, 0.0  ;;  %v618_v0 = vsel %vm575_vm11, %v573_v55, 0.0  ;;  %v760_v27 = vrot.slane %v759_v12, 1  ;;  %v603_v45 = vadd.f32 %v602_v26, %v601_v11  ;;  %v939_v8 = vld [vmem:[#allocation8 + $0x78] sm:$0xff]  ;;  %s977_s17 = scalar_lea.hbm %s1864_s8, %s1193_s25 }
  0xc2   : > { %v513_v59 = vpop.permute.xlu1 %512  ;;  %v585_v61 = vadd.f32 %v584_v53, %v583_v51  ;;  %v770_v4 = vrot.slane %v769_v62, 4  ;;  %v619_v5 = vrot.slane %v618_v0, 4  ;;  %v767_v32 = vrot.slane %v766_v15, 1  ;;  %944 = vmatpush.msra.mxu0 %v939_v8  ;;  %s981_s21 = sshll.u32 %s977_s17, 4  ;;  %s982_s21 = int_to_ptr.hbm [resolvable:$true] %s981_s21 }
  0xc3   : > { %vm535_vm2 = vcmp.lt.s32.totalorder %v1684_v60, %v513_v59  ;;  %v802_v35 = vrot.slane %v801_v18, 1  ;;  %v1745_v53 = vadd.f32 %v760_v27, %v759_v12  ;;  %vm883_vm0 = vcmask 1047559   ;;  %s1395_s6 = sshra.s32 %s982_s21, 4  ;;  %s1396_s6 = int_to_ptr.hbm [resolvable:$true] %s1395_s6 }
  0xc4   : > { %v705_v7 = vpop.permute.xlu0 %704  ;;  %v586_v9 = vrot.slane %v585_v61, 2  ;;  %v1176_v10 = vsel %vm535_vm2, 1.0, %v1477_v63  ;;  %v771_v16 = vadd.f32 %v770_v4, %v769_v62  ;;  %v620_v19 = vadd.f32 %v619_v5, %v618_v0  ;;  %v1741_v47 = vpop.permute.xlu2 %650  ;;  %s1397_s30 = scalar_lea.hbm %s1396_s6, 8  ;;  %p1402_p12 = scmp.lt.s32.totalorder %s1396_s6, %s1864_s8 }
  0xc5   : > { %vm719_vm3 = vcmp.lt.s32.totalorder %v1684_v60, %v705_v7  ;;  %v567_v13 = vmul.f32 %v1176_v10, %v559_v1  ;;  %v1747_v54 = vadd.f32 %v767_v32, %v766_v15  ;;  %v1751_v57 = vadd.f32 %v802_v35, %v801_v18  ;;  %p1398_p1 = scmp.ne.s32.totalorder %s1396_s6, %s1397_s30  ;;  %p1403_p13 = scmp.lt.s32.totalorder %s1401_s14, %s1397_s30 }
  0xc6   : > { %v1188_v14 = vsel %vm719_vm3, 1.0, %v1477_v63  ;;  %v587_v22 = vadd.f32 %v586_v9, %v585_v61  ;;  %v772_v33 = vrot.slane %v771_v16, 2  ;;  %v621_v36 = vrot.slane %v620_v19, 2  ;;  %v938_v9 = vld [vmem:[#allocation8 + $0x70] sm:$0xff] }
  0xc7   : > { %v751_v17 = vmul.f32 %v1188_v14, %v743_v6  ;;  %v576_v20 = vsel %vm575_vm11, %v567_v13, 0.0  ;;  %v652_v59 = vrot.slane %v1741_v47, 1  ;;  %v653_v0 = vrot.slane %v1741_v47, 2  ;;  %v564_v14 = vld [vmem:[%s1638_s23 + $0x28] sm:$0xff]  ;;  %945 = vmatpush.msra.mxu0 %v938_v9  ;;  %p1399_p4 = pnand %p1398_p1, %p1604_p5  ;;  %p1404_p0 = por %p1403_p13, %p1402_p12 }
  0xc8   : > { %v577_v23 = vrot.slane %v576_v20, 4  ;;  %v588_v41 = vrot.slane %v587_v22, 1  ;;  %v773_v49 = vadd.f32 %v772_v33, %v771_v16  ;;  %v1749_v55 = vadd.f32 %v621_v36, %v620_v19  ;;  %v937_v19 = vld [vmem:[#allocation8 + $0x68] sm:$0xff] }
  0xc9   : > { %v783_v24 = vsel %vm575_vm11, %v751_v17, 0.0  ;;  %v655_v7 = vrot.slane %v1741_v47, 4  ;;  %v654_v17 = vrot.slane %v1741_v47, 3  ;;  %v656_v33 = vrot.slane %v1741_v47, 5  ;;  %946 = vmatpush.msra.mxu0 %v937_v19  ;;  %p1400_p10 = pneg %p1399_p4 }
  0xca   : > { %v784_v28 = vrot.slane %v783_v24, 4  ;;  %v525_v30 = vpop.permute.xlu1 %524  ;;  %v578_v34 = vadd.f32 %v577_v23, %v576_v20  ;;  %v589_v58 = vadd.f32 %v588_v41, %v587_v22  ;;  %v774_v5 = vrot.slane %v773_v49, 1 }
  0xcb   : > { %vm539_vm4 = vcmp.lt.s32.totalorder %v1684_v60, %v525_v30  ;;  %v623_v10 = vrot.slane %v1749_v55, 1  ;;  %v1770_v35 = vmul.f32 %v653_v0, %v596_v44  ;;  %v1772_v36 = vmul.f32 %v654_v17, %v603_v45  ;;  %v934_v44 = vld [vmem:[#allocation8 + $0x50] sm:$0xff]  ;;  %p1405_p3 = pnand %p1404_p0, %p1400_p10 }
  0xcc   : > { %v785_v37 = vadd.f32 %v784_v28, %v783_v24  ;;  %v1180_v38 = vsel %vm539_vm4, 1.0, %v1477_v63  ;;  %v708_v40 = vpop.permute.xlu0 %707  ;;  %v579_v42 = vrot.slane %v578_v34, 2  ;;  %v1764_v18 = vmul.f32 %v652_v59, %v589_v58 }
  0xcd   : > { %v571_v43 = vmul.f32 %v1180_v38, %v563_v29  ;;  %vm720_vm5 = vcmp.lt.s32.totalorder %v1684_v60, %v708_v40  ;;  %v775_v25 = vadd.f32 %v774_v5, %v773_v49  ;;  %v936_v29 = vld [vmem:[#allocation8 + $0x60] sm:$0xff]  ;;  %v935_v38 = vld [vmem:[#allocation8 + $0x58] sm:$0xff]  ;;  %vm918_vm1 = vcmask 523264  }
  0xce   : > { %v786_v46 = vrot.slane %v785_v37, 2  ;;  %v1189_v48 = vsel %vm720_vm5, 1.0, %v1477_v63  ;;  %v580_v50 = vadd.f32 %v579_v42, %v578_v34  ;;  %947 = vmatpush.msra.mxu0 %v936_v29  ;;  %vm920_vm2 = vcmask 785408  }
  0xcf   : > { %v604_v51 = vsel %vm575_vm11, %v571_v43, 0.0  ;;  %v752_v52 = vmul.f32 %v1189_v48, %v744_v39 }
  0xd0   : > { %v605_v56 = vrot.slane %v604_v51, 4  ;;  %v787_v62 = vadd.f32 %v786_v46, %v785_v37  ;;  %v581_v6 = vrot.slane %v580_v50, 1  ;;  %v900_v37 = vrot.slane %v1764_v18, 7  ;;  %948 = vmatpush.msra.mxu0 %v935_v38 }
  0xd1   : > { %v790_v61 = vsel %vm575_vm11, %v752_v52, 0.0  ;;  %v566_v52 = vld [vmem:[%s1638_s23 + $0x38] sm:$0xff] }
  0xd2   : > { %v606_v1 = vadd.f32 %v605_v56, %v604_v51  ;;  %v791_v2 = vrot.slane %v790_v61, 4  ;;  %v714_v4 = vpop.permute.xlu1 %713  ;;  %v788_v20 = vrot.slane %v787_v62, 1  ;;  %v582_v26 = vadd.f32 %v581_v6, %v580_v50  ;;  %949 = vmatpush.msra.mxu0 %v934_v44 }
  0xd3   : > { %vm722_vm6 = vcmp.lt.s32.totalorder %v1684_v60, %v714_v4 }
  0xd4   : > { %v607_v11 = vrot.slane %v606_v1, 2  ;;  %v792_v12 = vadd.f32 %v791_v2, %v790_v61  ;;  %v1191_v13 = vsel %vm722_vm6, 1.0, %v1477_v63  ;;  %v528_v15 = vpop.permute.xlu0 %527  ;;  %v789_v39 = vadd.f32 %v788_v20, %v787_v62 }
  0xd5   : > { %v754_v16 = vmul.f32 %v1191_v13, %v746_v3  ;;  %vm540_vm7 = vcmp.lt.s32.totalorder %v1684_v60, %v528_v15  ;;  %v667_v50 = vmul.f32 %v1741_v47, %v582_v26 }
  0xd6   : > { %v608_v22 = vadd.f32 %v607_v11, %v606_v1  ;;  %v793_v23 = vrot.slane %v792_v12, 2  ;;  %v1181_v24 = vsel %vm540_vm7, 1.0, %v1477_v63  ;;  %v933_v1 = vld [vmem:[#allocation8 + $0x48] sm:$0xff] }
  0xd7   : > { %v804_v27 = vsel %vm575_vm11, %v754_v16, 0.0  ;;  %v572_v28 = vmul.f32 %v1181_v24, %v564_v14  ;;  %950 = vmatpush.msra.mxu0 %v933_v1  ;;  %v901_v24 = vsel %vm865_vm8, %v900_v37, %v667_v50  ;;  %v624_v37 = vadd.f32 %v623_v10, %v1749_v55  ;;  %v928_v1 = vld [vmem:[#allocation8 + $0x20] sm:$0xff] }
  0xd8   : > { %v609_v30 = vrot.slane %v608_v22, 1  ;;  %v794_v31 = vadd.f32 %v793_v23, %v792_v12  ;;  %v805_v32 = vrot.slane %v804_v27, 4 }
  0xd9   : > { %v611_v34 = vsel %vm575_vm11, %v572_v28, 0.0 }
  0xda   : > { %v795_v40 = vrot.slane %v794_v31, 1  ;;  %v806_v41 = vadd.f32 %v805_v32, %v804_v27  ;;  %v612_v42 = vrot.slane %v611_v34, 4  ;;  %v830_v43 = vpop.permute.xlu1 %829  ;;  %v610_v46 = vadd.f32 %v609_v30, %v608_v22 }
  0xdb   : > { %v831_v48 = vrot.slane %v830_v43, 1  ;;  %v832_v49 = vrot.slane %v830_v43, 2  ;;  %v833_v58 = vrot.slane %v830_v43, 3  ;;  %v834_v59 = vrot.slane %v830_v43, 4 }
  0xdc   : > { %v807_v51 = vrot.slane %v806_v41, 2  ;;  %v613_v45 = vadd.f32 %v612_v42, %v611_v34  ;;  %v534_v56 = vpop.permute.xlu0 %533  ;;  %v796_v61 = vadd.f32 %v795_v40, %v794_v31  ;;  %v835_v62 = vrot.slane %v830_v43, 5 }
  0xdd   : > { %vm542_vm13 = vcmp.lt.s32.totalorder %v1684_v60, %v534_v56  ;;  %v836_v0 = vrot.slane %v830_v43, 6  ;;  %v837_v5 = vrot.slane %v830_v43, 7  ;;  %v846_v8 = vmul.f32 %v830_v43, %v1745_v53 }
  0xde   : > { %v808_v2 = vadd.f32 %v807_v51, %v806_v41  ;;  %v614_v3 = vrot.slane %v613_v45, 2  ;;  %v1183_v4 = vsel %vm542_vm13, 1.0, %v1477_v63  ;;  %v847_v9 = vmul.f32 %v831_v48, %v1747_v54 }
  0xdf   : > { %v574_v6 = vmul.f32 %v1183_v4, %v566_v52  ;;  %v848_v11 = vmul.f32 %v832_v49, %v775_v25  ;;  %v849_v13 = vmul.f32 %v833_v58, %v1733_v21  ;;  %v850_v14 = vmul.f32 %v834_v59, %v789_v39  ;;  %v925_v4 = vld [vmem:[#allocation8 + $0x8] sm:$0xff] }
  0xe0   : > { %v809_v12 = vrot.slane %v808_v2, 1  ;;  %v615_v60 = vadd.f32 %v614_v3, %v613_v45  ;;  %v851_v16 = vmul.f32 %v835_v62, %v796_v61  ;;  %v852_v63 = vmul.f32 %v836_v0, %v1751_v57  ;;  %v931_v62 = vld [vmem:[#allocation8 + $0x38] sm:$0xff]  ;;  %v929_v0 = vld [vmem:[#allocation8 + $0x28] sm:$0xff]  ;;  %v926_v3 = vld [vmem:[#allocation8 + $0x10] sm:$0xff] }
  0xe1   : > { %v625_v15 = vsel %vm575_vm11, %v574_v6, 0.0  ;;  %v864_v17 = vrot.slane %v847_v9, 7  ;;  %v867_v22 = vrot.slane %v848_v11, 6  ;;  %v870_v54 = vrot.slane %v849_v13, 5  ;;  %v854_v6 = vld [vmem:[%s481_s9] sm:$0xff] }
  0xe2   : > { %v616_v18 = vrot.slane %v615_v60, 1  ;;  %v626_v19 = vrot.slane %v625_v15, 4  ;;  %v810_v20 = vadd.f32 %v809_v12, %v808_v2  ;;  %v873_v23 = vrot.slane %v850_v14, 4  ;;  %v927_v2 = vld [vmem:[#allocation8 + $0x18] sm:$0xff]  ;;  %v1286_v14 = vld [vmem:[%s1894_s12] ss:$0 sm:$0xff] }
  0xe3   : > { %v866_v53 = vsel %vm865_vm8, %v864_v17, %v846_v8  ;;  %v671_v28 = vmul.f32 %v655_v7, %v610_v46  ;;  %v876_v29 = vrot.slane %v851_v16, 3  ;;  %v879_v30 = vrot.slane %v852_v63, 2 }
  0xe4   : > { %v617_v25 = vadd.f32 %v616_v18, %v615_v60  ;;  %v627_v21 = vadd.f32 %v626_v19, %v625_v15  ;;  %v853_v26 = vmul.f32 %v837_v5, %v810_v20  ;;  %v869_v27 = vsel %vm868_vm9, %v867_v22, %v866_v53  ;;  %v924_v5 = vld [vmem:[#allocation8] sm:$0xff] }
  0xe5   : > { %v872_v57 = vsel %vm871_vm10, %v870_v54, %v869_v27  ;;  %v902_v40 = vrot.slane %v1770_v35, 6  ;;  %v906_v42 = vrot.slane %v671_v28, 4  ;;  %v657_v46 = vrot.slane %v1741_v47, 6 }
  0xe6   : > { %v628_v31 = vrot.slane %v627_v21, 2  ;;  %v875_v32 = vsel %vm874_vm14, %v873_v23, %v872_v57  ;;  %v882_v34 = vrot.slane %v853_v26, 1  ;;  %v672_v38 = vmul.f32 %v656_v33, %v617_v25 }
  0xe7   : > { %v878_v39 = vsel %vm877_vm12, %v876_v29, %v875_v32  ;;  %v903_v48 = vsel %vm868_vm9, %v902_v40, %v901_v24  ;;  %v904_v33 = vrot.slane %v1772_v36, 5  ;;  %v673_v10 = vmul.f32 %v657_v46, %v624_v37  ;;  %v932_v36 = vld [vmem:[#allocation8 + $0x40] sm:$0xff] }
  0xe8   : > { %v629_v7 = vadd.f32 %v628_v31, %v627_v21  ;;  %v881_v41 = vsel %vm880_vm15, %v879_v30, %v878_v39  ;;  %v908_v55 = vrot.slane %v672_v38, 3  ;;  %v658_v35 = vrot.slane %v1741_v47, 7  ;;  %951 = vmatpush.msra.mxu0 %v932_v36  ;;  %v930_v47 = vld [vmem:[#allocation8 + $0x30] sm:$0xff] }
  0xe9   : > { %v884_v43 = vsel %vm883_vm0, %v882_v34, %v881_v41  ;;  %v905_v44 = vsel %vm871_vm10, %v904_v33, %v903_v48  ;;  %v910_v56 = vrot.slane %v673_v10, 2 }
  0xea   : > { %v630_v49 = vrot.slane %v629_v7, 1  ;;  %885 = vrot.lane.b32.xlu0 %v884_v43, %s1479_s22  ;;  %v907_v51 = vsel %vm874_vm14, %v906_v42, %v905_v44  ;;  %952 = vmatpush.msra.mxu0 %v931_v62 }
  0xeb   : > { %v909_v52 = vsel %vm877_vm12, %v908_v55, %v907_v51 }
  0xec   : > { %v631_v50 = vadd.f32 %v630_v49, %v629_v7  ;;  %v911_v59 = vsel %vm880_vm15, %v910_v56, %v909_v52  ;;  %953 = vmatpush.msra.mxu0 %v930_v47 }
  0xee   : > { %v674_v45 = vmul.f32 %v658_v35, %v631_v50  ;;  %954 = vmatpush.msra.mxu0 %v929_v0 }
  0xf0   : > { %v912_v58 = vrot.slane %v674_v45, 1  ;;  %955 = vmatpush.msra.mxu0 %v928_v1 }
  0xf2   : > { %v913_v61 = vsel %vm883_vm0, %v912_v58, %v911_v59  ;;  %956 = vmatpush.msra.mxu0 %v927_v2 }
  0xf3   : > { %914 = vrot.lane.b32.xlu2 %v913_v61, %s1480_s27 }
  0xf4   : > { %957 = vmatpush.msra.mxu0 %v926_v3 }
  0xf6   : > { %958 = vmatpush.msra.mxu0 %v925_v4 }
  0xf8   : > { %959 = vmatpush.msra.mxu0 %v924_v5 }
 0x12d   : > { %v890_v8 = vpop.permute.xlu1 %889 }
 0x14d   : > { %v915_v12 = vpop.permute.xlu2 %914 }
 0x15c   : > { %v886_v9 = vpop.permute.xlu0 %885 }
 0x15d   : > { %v917_v11 = vsel %vm575_vm11, %v854_v6, %v886_v9 }
 0x15e   : > { %v919_v60 = vsel %vm918_vm1, %v917_v11, %v890_v8 }
 0x15f   : > { %v921_v13 = vsel %vm920_vm2, %v919_v60, %v915_v12 }
 0x160   : > { %960 = vmatmul.f32.vlgmr.msra.gmra.mxu0 %v921_v13 }
 0x1dd   : > { %v961_v15 = vpop.f32.mrf.mxu0 }
 0x1de   : > { %v962_v16 = vadd.f32 %v1286_v14, %v961_v15 }
 0x1e0   : > { %964 = vst [vmem:[%s467_s11] sm:$0xff] %v962_v16 }
 0x1e1   : > { %1408 = shalt.err (!%p1405_p3)
}
 0x1e2   : > { %1206 = dma.vmem_to_hbm [thread:$0]  (%p1604_p5), %s980_s24, 128, %s982_s21, %s966_s20  }
 0x1e3 PF: > { %s1895_s7 = sld [smem:[#allocation14_spill]]  ;;  %p1220_p7 = pnand %p1160_p11, %p1571_p6 }
 0x1e5   : > { %p1221_p9 = pneg %p1220_p7 }
 0x1e9   : > { %s993_s25 = sand.u32 1, %s1895_s7  }
 0x1ea   : > { %s994_s26 = scalar_lea.sflag [#allocation5], %s993_s25 }
 0x1eb   : > { %1446 = dma.done.wait (%p1221_p9), %s994_s26, 128  }
 0x1ec   : > { %1448 = vsyncadd (%p1221_p9), %s994_s26, 4294967168  ;;  %s27_s10 = sadd.s32 1, %s1471_s10   ;;  %s1897_s16 = sld [smem:[#allocation19_spill]] }
 0x1ed   : > { %p24_p2 = scmp.ge.s32.totalorder %s27_s10, 4   ;;  %s1898_s30 = sld [smem:[#allocation15_spill]] }
 0x1ee   : > { %s1899_s9 = sld [smem:[#allocation17_spill]]  ;;  %s1900_s27 = smov %s1455_s28 }
 0x1ef   : > { %s1901_s28 = smov %s1459_s29  ;;  %26 = sbr.rel (!%p24_p2) target bundleno = 11 (0xb), region = 134 }
 0x1f2   : > { %s1902_s29 = smov %s1897_s16 }
 0x1f4   :  { %1000 = vsyncpa [#allocation4], 1 }
 0x1f5   :  { %1002 = vsyncpa [#allocation4 + $0x1], 1 }
 0x1f6   :  { %1003 = vsyncpa [#allocation7], 1 }
 0x1f7   :  { %1005 = vsyncpa [#allocation7 + $0x1], 1 }
 0x1f8   :  { %1006 = vsyncpa [#allocation5], 1 }
 0x1f9   :  { %1008 = vsyncpa [#allocation5 + $0x1], 1 }

</bundles_post_ra>
